<compile_context>
chip_gen: v7x
topology: tpu7x:2x2x1
jax: 0.10.0
libtpu: 0.0.40
codegen_flags: <defaults>
</compile_context>

<pallas_src>
import numpy as np
import jax
import jax.numpy as jnp
from jax.experimental import pallas as pl
from jax.experimental.pallas import tpu as pltpu

_LANE = 128  # vreg lane width; VMEM blocks lane-pad their minor dim to this


def _round_up(x: int, m: int) -> int:
    return (x + m - 1) // m * m


def _cdiv(a: int, b: int) -> int:
    return -(-a // b)


# ----------------------------------------------------------------------------- kernel
def _link_predictor_kernel(scalars_ref, times_ref, x1_ref, x2_ref,
                           wt_lo_ref, wt_hi_ref, pr_lo_ref, pr_hi_ref,
                           w1a_lo_ref, w1a_hi_ref, w1b_lo_ref, w1b_hi_ref,
                           b1_ref, w2_ref, out_ref):
    lamb = scalars_ref[0]          # SMEM scalar
    b2 = scalars_ref[1]            # SMEM scalar

    t = times_ref[...]                                              # (TB, 1) f32
    # TimeEncoder: cos(t * w + 0); prompt modulation p = prompts + te * lamb,
    # computed per half of the duplicated feature vector (f32 on the VPU/EUP).
    p_lo = pr_lo_ref[...] + jnp.cos(t * wt_lo_ref[...]) * lamb      # (TB, d)
    p_hi = pr_hi_ref[...] + jnp.cos(t * wt_hi_ref[...]) * lamb      # (TB, d)

    # Inputs may arrive as bf16 (HBM-traffic halving); upcast immediately so the
    # elementwise / normalization chain is f32 on every TPU generation.
    x1 = x1_ref[...].astype(jnp.float32)                            # (TB, d)
    x2 = x2_ref[...].astype(jnp.float32)                            # (TB, d)
    # src = [x1, x1] * p and dst = [x2, x2] * p, kept as (lo, hi) halves.
    s_lo, s_hi = x1 * p_lo, x1 * p_hi
    d_lo, d_hi = x2 * p_lo, x2 * p_hi

    # F.normalize(x) = x / max(||x||_2, 1e-12) == x * rsqrt(max(||x||^2, 1e-24))
    s_inv = jax.lax.rsqrt(jnp.maximum(
        jnp.sum(s_lo * s_lo + s_hi * s_hi, axis=1, keepdims=True), 1e-24))
    d_inv = jax.lax.rsqrt(jnp.maximum(
        jnp.sum(d_lo * d_lo + d_hi * d_hi, axis=1, keepdims=True), 1e-24))
    s_lo, s_hi = s_lo * s_inv, s_hi * s_inv
    d_lo, d_hi = d_lo * d_inv, d_hi * d_inv

    # MergeLayer MLP: relu([src, dst] @ W1 + b1) @ w2 + b2.  W1 is pre-split so the
    # concatenation never materializes; all contractions run on the MXU with f32
    # accumulation.  Activations are fed to the MXU in the weight dtype (bf16 path).
    mm = w1a_lo_ref.dtype
    h = jnp.dot(s_lo.astype(mm), w1a_lo_ref[...], preferred_element_type=jnp.float32)
    h += jnp.dot(s_hi.astype(mm), w1a_hi_ref[...], preferred_element_type=jnp.float32)
    h += jnp.dot(d_lo.astype(mm), w1b_lo_ref[...], preferred_element_type=jnp.float32)
    h += jnp.dot(d_hi.astype(mm), w1b_hi_ref[...], preferred_element_type=jnp.float32)
    # TODO(synk): nn.Dropout is training-mode only; this kernel implements the eval
    # forward pass (dropout = identity).
    h = jnp.maximum(h + b1_ref[...], 0.0)                           # (TB, H) f32

    out_ref[...] = jnp.dot(h, w2_ref[...],
                           preferred_element_type=jnp.float32) + b2  # (TB, 1)


# ----------------------------------------------------------------------------- tiling
def _choose_tiling(B, d, H, io_itemsize, block_b, vmem_budget_bytes, align):
    """Pick (TB, Bp, n_steps, vmem_limit) under an explicit VMEM budget.

    Counts the double-buffered, lane-padded VMEM blocks:
      * x1, x2       : 2 arrays x 2 buffers x TB x round_up(d, 128) x itemsize
      * times, out   : (TB, 1) f32 columns lane-pad to 128 lanes -> TB*512 B / buffer
      * W1 splits etc: grid-invariant, double-buffered by default
    and caps TB so the total stays inside `vmem_budget_bytes` (safe for v7x's 64 MiB
    physical / 32 MiB default scoped, v6e/v5e defaults, with vmem_limit_bytes set
    explicitly to cover v5e's 16 MiB default scoped limit).
    """
    B8 = _round_up(max(B, 1), align)

    per_row = (2 * 2 * _round_up(d, _LANE) * io_itemsize   # x1, x2 (double-buffered)
               + 2 * _LANE * 4                             # times (TB,1) lane-padded
               + 2 * _LANE * 4)                            # out   (TB,1) lane-padded
    param_bytes = 2 * (4 * _round_up(d, 8) * _round_up(H, _LANE) * io_itemsize   # W1 splits
                       + 5 * 8 * _round_up(max(2 * d, H), _LANE) * 4             # w_t/prompts/b1
                       + _round_up(H, 8) * _LANE * 4)                            # w2

    rows_cap = max(align, (vmem_budget_bytes - param_bytes) // per_row)
    tb_cap = max(align, (min(block_b, rows_cap) // align) * align)

    n_steps = max(1, _cdiv(B8, tb_cap))
    if B8 >= 2 * align:
        # >= 2 grid steps so the "parallel" batch axis can shard across v7x's 2 TCs.
        n_steps = max(n_steps, 2)
    TB = _round_up(_cdiv(B8, n_steps), align)
    Bp = TB * n_steps

    est_vmem = per_row * TB + param_bytes
    vmem_limit = int(min(48 << 20, max(16 << 20, est_vmem + (4 << 20))))
    return TB, Bp, n_steps, vmem_limit


# ---------------------------------------------------------------------------- wrapper
def link_predictor_forward(input_1, input_2, times,
                           prompts, w_time, w1, b1, w2, b2, lamb,
                           *, io_dtype=jnp.float32, block_b=8192,
                           vmem_budget_bytes=20 << 20):
    """Fused LinkPredictor forward.  io_dtype=jnp.bfloat16 halves x1/x2/W1 HBM traffic
    (accumulation stays f32); io_dtype=jnp.float32 matches the PyTorch module bit-for-bit
    semantics."""
    io_dtype = jnp.dtype(io_dtype)
    input_1 = jnp.asarray(input_1, io_dtype)
    input_2 = jnp.asarray(input_2, io_dtype)
    B, d = input_1.shape
    D = 2 * d                               # prompt_dim
    w1 = jnp.asarray(w1, io_dtype)          # (2D, H) = (4d, H)
    H = w1.shape[1]

    align = 16 if io_dtype == jnp.dtype(jnp.bfloat16) else 8
    TB, Bp, n_steps, vmem_limit = _choose_tiling(
        B, d, H, io_dtype.itemsize, block_b, vmem_budget_bytes, align)

    times2 = jnp.asarray(times, jnp.float32).reshape(B, 1)
    if Bp != B:
        pad = ((0, Bp - B), (0, 0))
        input_1 = jnp.pad(input_1, pad)
        input_2 = jnp.pad(input_2, pad)
        times2 = jnp.pad(times2, pad)

    w_time = jnp.asarray(w_time, jnp.float32).reshape(1, D)
    prompts = jnp.asarray(prompts, jnp.float32).reshape(1, D)
    # Split so that neither the [x, x] duplication nor the [src, dst] concat is ever
    # materialized (kernel does four K=d MXU dots instead):
    w1a_lo, w1a_hi = w1[0:d], w1[d:D]                     # act on src halves
    w1b_lo, w1b_hi = w1[D:D + d], w1[D + d:2 * D]         # act on dst halves
    wt_lo, wt_hi = w_time[:, :d], w_time[:, d:]
    pr_lo, pr_hi = prompts[:, :d], prompts[:, d:]

    scalars = jnp.array([lamb, b2], dtype=jnp.float32)    # SMEM scalars

    tile_b = lambda i: (i, 0)
    invariant = lambda i: (0, 0)

    out = pl.pallas_call(
        _link_predictor_kernel,
        out_shape=jax.ShapeDtypeStruct((Bp, 1), jnp.float32),
        grid=(n_steps,),
        in_specs=[
            pl.BlockSpec(memory_space=pltpu.MemorySpace.SMEM),   # [lamb, b2]
            pl.BlockSpec((TB, 1), tile_b),                       # times
            pl.BlockSpec((TB, d), tile_b),                       # input_1
            pl.BlockSpec((TB, d), tile_b),                       # input_2
            pl.BlockSpec((1, d), invariant),                     # w_time (lo)
            pl.BlockSpec((1, d), invariant),                     # w_time (hi)
            pl.BlockSpec((1, d), invariant),                     # prompts (lo)
            pl.BlockSpec((1, d), invariant),                     # prompts (hi)
            pl.BlockSpec((d, H), invariant),                     # W1a (lo)
            pl.BlockSpec((d, H), invariant),                     # W1a (hi)
            pl.BlockSpec((d, H), invariant),                     # W1b (lo)
            pl.BlockSpec((d, H), invariant),                     # W1b (hi)
            pl.BlockSpec((1, H), invariant),                     # b1
            pl.BlockSpec((H, 1), invariant),                     # w2
        ],
        out_specs=pl.BlockSpec((TB, 1), tile_b),
        compiler_params=pltpu.CompilerParams(
            dimension_semantics=("parallel",),                   # shard batch across TCs
            vmem_limit_bytes=vmem_limit),
    )(scalars, times2, input_1, input_2,
      wt_lo, wt_hi, pr_lo, pr_hi,
      w1a_lo, w1a_hi, w1b_lo, w1b_hi,
      jnp.asarray(b1, jnp.float32).reshape(1, H),
      jnp.asarray(w2, jnp.float32).reshape(H, 1))
    return out[:B]


# -------------------------------------------------------------------------- reference
def reference_forward(input_1, input_2, times,
                      prompts, w_time, w1, b1, w2, b2, lamb):
    """Pure-JAX re-implementation of the PyTorch LinkPredictor.forward (eval mode)."""
    input_1 = jnp.asarray(input_1, jnp.float32)
    input_2 = jnp.asarray(input_2, jnp.float32)
    src = jnp.concatenate([input_1, input_1], axis=1)
    dst = jnp.concatenate([input_2, input_2], axis=1)
    te = jnp.cos(jnp.asarray(times, jnp.float32)[:, None] * w_time[None, :])
    p = prompts + te * lamb
    src = src * p
    dst = dst * p
    src = src / jnp.maximum(jnp.linalg.norm(src, axis=1, keepdims=True), 1e-12)
    dst = dst / jnp.maximum(jnp.linalg.norm(dst, axis=1, keepdims=True), 1e-12)
    x = jnp.concatenate([src, dst], axis=1)
    h = jnp.maximum(x @ jnp.asarray(w1, jnp.float32) + b1, 0.0)   # dropout = identity
    return h @ w2 + b2                                            # (B, 1)


# ------------------------------------------------------------------------------- main
def _make_problem(key, B, d_half):
    D = 2 * d_half
    H = D
    k1, k2, k3, k4, k5, k6 = jax.random.split(key, 6)
    input_1 = jax.random.normal(k1, (B, d_half), dtype=jnp.float32)
    input_2 = jax.random.normal(k2, (B, d_half), dtype=jnp.float32)
    times = jax.random.uniform(k3, (B,), dtype=jnp.float32, maxval=10.0)
    prompts = jnp.ones((1, D), dtype=jnp.float32)                       # nn.Parameter(ones)
    w_time = jnp.asarray(1.0 / 10.0 ** np.linspace(0, 9, D, dtype=np.float32))
    lamb = 0.5
    w1 = jax.random.normal(k4, (2 * D, H), dtype=jnp.float32) * 0.1     # fc1
    b1 = jax.random.normal(k5, (H,), dtype=jnp.float32) * 0.01
    w2 = jax.random.normal(k6, (H, 1), dtype=jnp.float32) * 0.1         # fc2
    b2 = 0.05
    return (input_1, input_2, times, prompts, w_time, w1, b1, w2, b2, lamb)


if __name__ == "__main__":
    key = jax.random.PRNGKey(0)
    k_small, k_big = jax.random.split(key)

    # 1) Small shapes (single grid step path), exact f32 semantics.
    args = _make_problem(k_small, B=8, d_half=16)
    out = jax.block_until_ready(link_predictor_forward(*args))
    ref = reference_forward(*args)
    np.testing.assert_allclose(np.asarray(out), np.asarray(ref), rtol=1e-4, atol=1e-5)

    # 2) Moderate, non-multiple batch (multi-step grid + padding path), f32.
    args = _make_problem(k_big, B=3000, d_half=64)
    out = jax.block_until_ready(link_predictor_forward(*args))
    ref = reference_forward(*args)
    np.testing.assert_allclose(np.asarray(out), np.asarray(ref), rtol=2e-4, atol=2e-4)

    # 3) Same problem with bf16 HBM I/O (f32 accumulation).  Reference uses the same
    #    bf16-rounded inputs/weights; residual error is from bf16 MXU inputs.
    (x1, x2, t, pr, wt, w1, b1, w2, b2, lamb) = args
    out_bf = jax.block_until_ready(
        link_predictor_forward(x1, x2, t, pr, wt, w1, b1, w2, b2, lamb,
                               io_dtype=jnp.bfloat16))
    rnd = lambda a: jnp.asarray(a, jnp.bfloat16).astype(jnp.float32)
    ref_bf = reference_forward(rnd(x1), rnd(x2), t, pr, wt, rnd(w1), b1, w2, b2, lamb)
    np.testing.assert_allclose(np.asarray(out_bf), np.asarray(ref_bf),
                               rtol=2e-2, atol=2e-2)

    print("KERNEL_OK")
</pallas_src>

<mosaic_0001>
module attributes {stable_mosaic.version = 11 : i64} {
  func.func @_link_predictor_kernel(%arg0: i32, %arg1: memref<2xf32, #tpu.memory_space<smem>>, %arg2: memref<8x1xf32, #tpu.memory_space<vmem>>, %arg3: memref<8x16xf32, #tpu.memory_space<vmem>>, %arg4: memref<8x16xf32, #tpu.memory_space<vmem>>, %arg5: memref<1x16xf32, #tpu.memory_space<vmem>>, %arg6: memref<1x16xf32, #tpu.memory_space<vmem>>, %arg7: memref<1x16xf32, #tpu.memory_space<vmem>>, %arg8: memref<1x16xf32, #tpu.memory_space<vmem>>, %arg9: memref<16x32xf32, #tpu.memory_space<vmem>>, %arg10: memref<16x32xf32, #tpu.memory_space<vmem>>, %arg11: memref<16x32xf32, #tpu.memory_space<vmem>>, %arg12: memref<16x32xf32, #tpu.memory_space<vmem>>, %arg13: memref<1x32xf32, #tpu.memory_space<vmem>>, %arg14: memref<32x1xf32, #tpu.memory_space<vmem>>, %arg15: memref<8x1xf32, #tpu.memory_space<vmem>>) attributes {dimension_semantics = [#tpu.dimension_semantics<parallel>], iteration_bounds = array<i64: 1>, scalar_prefetch = 0 : i64, scratch_operands = 0 : i64, tpu.core_type = #tpu.core_type<tc>, window_params = [{transform_indices = @transform_0, window_bounds = array<i64: 2>}, {transform_indices = @transform_1, window_bounds = array<i64: 8, 1>}, {transform_indices = @transform_2, window_bounds = array<i64: 8, 16>}, {transform_indices = @transform_3, window_bounds = array<i64: 8, 16>}, {pipeline_mode = #tpu.pipeline_mode<synchronous>, transform_indices = @transform_4, window_bounds = array<i64: 1, 16>}, {pipeline_mode = #tpu.pipeline_mode<synchronous>, transform_indices = @transform_5, window_bounds = array<i64: 1, 16>}, {pipeline_mode = #tpu.pipeline_mode<synchronous>, transform_indices = @transform_6, window_bounds = array<i64: 1, 16>}, {pipeline_mode = #tpu.pipeline_mode<synchronous>, transform_indices = @transform_7, window_bounds = array<i64: 1, 16>}, {pipeline_mode = #tpu.pipeline_mode<synchronous>, transform_indices = @transform_8, window_bounds = array<i64: 16, 32>}, {pipeline_mode = #tpu.pipeline_mode<synchronous>, transform_indices = @transform_9, window_bounds = array<i64: 16, 32>}, {pipeline_mode = #tpu.pipeline_mode<synchronous>, transform_indices = @transform_10, window_bounds = array<i64: 16, 32>}, {pipeline_mode = #tpu.pipeline_mode<synchronous>, transform_indices = @transform_11, window_bounds = array<i64: 16, 32>}, {pipeline_mode = #tpu.pipeline_mode<synchronous>, transform_indices = @transform_12, window_bounds = array<i64: 1, 32>}, {pipeline_mode = #tpu.pipeline_mode<synchronous>, transform_indices = @transform_13, window_bounds = array<i64: 32, 1>}, {transform_indices = @transform_14, window_bounds = array<i64: 8, 1>}]} {
    %c0 = arith.constant 0 : index
    %0 = memref.load %arg1[%c0] : memref<2xf32, #tpu.memory_space<smem>>
    %c1 = arith.constant 1 : index
    %1 = memref.load %arg1[%c1] : memref<2xf32, #tpu.memory_space<smem>>
    %c0_0 = arith.constant 0 : index
    %c0_1 = arith.constant 0 : index
    %2 = vector.load %arg2[%c0_0, %c0_1] : memref<8x1xf32, #tpu.memory_space<vmem>>, vector<8x1xf32>
    %c0_2 = arith.constant 0 : index
    %c0_3 = arith.constant 0 : index
    %3 = vector.load %arg7[%c0_2, %c0_3] : memref<1x16xf32, #tpu.memory_space<vmem>>, vector<1x16xf32>
    %c0_4 = arith.constant 0 : index
    %c0_5 = arith.constant 0 : index
    %4 = vector.load %arg5[%c0_4, %c0_5] : memref<1x16xf32, #tpu.memory_space<vmem>>, vector<1x16xf32>
    %5 = vector.broadcast %2 : vector<8x1xf32> to vector<8x16xf32>
    %6 = vector.broadcast %4 : vector<1x16xf32> to vector<8x16xf32>
    %7 = arith.mulf %5, %6 : vector<8x16xf32>
    %8 = math.cos %7 : vector<8x16xf32>
    %9 = vector.broadcast %0 : f32 to vector<8x16xf32>
    %10 = arith.mulf %8, %9 : vector<8x16xf32>
    %11 = vector.broadcast %3 : vector<1x16xf32> to vector<8x16xf32>
    %12 = arith.addf %11, %10 : vector<8x16xf32>
    %c0_6 = arith.constant 0 : index
    %c0_7 = arith.constant 0 : index
    %13 = vector.load %arg8[%c0_6, %c0_7] : memref<1x16xf32, #tpu.memory_space<vmem>>, vector<1x16xf32>
    %c0_8 = arith.constant 0 : index
    %c0_9 = arith.constant 0 : index
    %14 = vector.load %arg6[%c0_8, %c0_9] : memref<1x16xf32, #tpu.memory_space<vmem>>, vector<1x16xf32>
    %15 = vector.broadcast %2 : vector<8x1xf32> to vector<8x16xf32>
    %16 = vector.broadcast %14 : vector<1x16xf32> to vector<8x16xf32>
    %17 = arith.mulf %15, %16 : vector<8x16xf32>
    %18 = math.cos %17 : vector<8x16xf32>
    %19 = vector.broadcast %0 : f32 to vector<8x16xf32>
    %20 = arith.mulf %18, %19 : vector<8x16xf32>
    %21 = vector.broadcast %13 : vector<1x16xf32> to vector<8x16xf32>
    %22 = arith.addf %21, %20 : vector<8x16xf32>
    %c0_10 = arith.constant 0 : index
    %c0_11 = arith.constant 0 : index
    %23 = vector.load %arg3[%c0_10, %c0_11] : memref<8x16xf32, #tpu.memory_space<vmem>>, vector<8x16xf32>
    %c0_12 = arith.constant 0 : index
    %c0_13 = arith.constant 0 : index
    %24 = vector.load %arg4[%c0_12, %c0_13] : memref<8x16xf32, #tpu.memory_space<vmem>>, vector<8x16xf32>
    %25 = arith.mulf %23, %12 : vector<8x16xf32>
    %26 = arith.mulf %23, %22 : vector<8x16xf32>
    %27 = arith.mulf %24, %12 : vector<8x16xf32>
    %28 = arith.mulf %24, %22 : vector<8x16xf32>
    %29 = arith.mulf %25, %25 : vector<8x16xf32>
    %30 = arith.mulf %26, %26 : vector<8x16xf32>
    %31 = arith.addf %29, %30 : vector<8x16xf32>
    %cst = arith.constant dense<0.000000e+00> : vector<8xf32>
    %32 = vector.multi_reduction <add>, %31, %cst [1] : vector<8x16xf32> to vector<8xf32>
    %33 = vector.shape_cast %32 : vector<8xf32> to vector<8x1xf32>
    %cst_14 = arith.constant 1.000000e-24 : f32
    %34 = vector.broadcast %cst_14 : f32 to vector<8x1xf32>
    %35 = arith.maximumf %33, %34 : vector<8x1xf32>
    %36 = math.rsqrt %35 : vector<8x1xf32>
    %37 = arith.mulf %27, %27 : vector<8x16xf32>
    %38 = arith.mulf %28, %28 : vector<8x16xf32>
    %39 = arith.addf %37, %38 : vector<8x16xf32>
    %cst_15 = arith.constant dense<0.000000e+00> : vector<8xf32>
    %40 = vector.multi_reduction <add>, %39, %cst_15 [1] : vector<8x16xf32> to vector<8xf32>
    %41 = vector.shape_cast %40 : vector<8xf32> to vector<8x1xf32>
    %cst_16 = arith.constant 1.000000e-24 : f32
    %42 = vector.broadcast %cst_16 : f32 to vector<8x1xf32>
    %43 = arith.maximumf %41, %42 : vector<8x1xf32>
    %44 = math.rsqrt %43 : vector<8x1xf32>
    %45 = vector.broadcast %36 : vector<8x1xf32> to vector<8x16xf32>
    %46 = arith.mulf %25, %45 : vector<8x16xf32>
    %47 = vector.broadcast %36 : vector<8x1xf32> to vector<8x16xf32>
    %48 = arith.mulf %26, %47 : vector<8x16xf32>
    %49 = vector.broadcast %44 : vector<8x1xf32> to vector<8x16xf32>
    %50 = arith.mulf %27, %49 : vector<8x16xf32>
    %51 = vector.broadcast %44 : vector<8x1xf32> to vector<8x16xf32>
    %52 = arith.mulf %28, %51 : vector<8x16xf32>
    %c0_17 = arith.constant 0 : index
    %c0_18 = arith.constant 0 : index
    %53 = vector.load %arg9[%c0_17, %c0_18] : memref<16x32xf32, #tpu.memory_space<vmem>>, vector<16x32xf32>
    %cst_19 = arith.constant dense<0.000000e+00> : vector<8x32xf32>
    %54 = tpu.matmul %46, %53, %cst_19 {dimension_numbers = #tpu.dot_dimension_numbers<[1], [0], [0], [1], [0, 0, 1, 1], [], []>} : vector<8x16xf32>, vector<16x32xf32>, vector<8x32xf32> -> vector<8x32xf32>
    %c0_20 = arith.constant 0 : index
    %c0_21 = arith.constant 0 : index
    %55 = vector.load %arg10[%c0_20, %c0_21] : memref<16x32xf32, #tpu.memory_space<vmem>>, vector<16x32xf32>
    %cst_22 = arith.constant dense<0.000000e+00> : vector<8x32xf32>
    %56 = tpu.matmul %48, %55, %cst_22 {dimension_numbers = #tpu.dot_dimension_numbers<[1], [0], [0], [1], [0, 0, 1, 1], [], []>} : vector<8x16xf32>, vector<16x32xf32>, vector<8x32xf32> -> vector<8x32xf32>
    %57 = arith.addf %54, %56 : vector<8x32xf32>
    %c0_23 = arith.constant 0 : index
    %c0_24 = arith.constant 0 : index
    %58 = vector.load %arg11[%c0_23, %c0_24] : memref<16x32xf32, #tpu.memory_space<vmem>>, vector<16x32xf32>
    %cst_25 = arith.constant dense<0.000000e+00> : vector<8x32xf32>
    %59 = tpu.matmul %50, %58, %cst_25 {dimension_numbers = #tpu.dot_dimension_numbers<[1], [0], [0], [1], [0, 0, 1, 1], [], []>} : vector<8x16xf32>, vector<16x32xf32>, vector<8x32xf32> -> vector<8x32xf32>
    %60 = arith.addf %57, %59 : vector<8x32xf32>
    %c0_26 = arith.constant 0 : index
    %c0_27 = arith.constant 0 : index
    %61 = vector.load %arg12[%c0_26, %c0_27] : memref<16x32xf32, #tpu.memory_space<vmem>>, vector<16x32xf32>
    %cst_28 = arith.constant dense<0.000000e+00> : vector<8x32xf32>
    %62 = tpu.matmul %52, %61, %cst_28 {dimension_numbers = #tpu.dot_dimension_numbers<[1], [0], [0], [1], [0, 0, 1, 1], [], []>} : vector<8x16xf32>, vector<16x32xf32>, vector<8x32xf32> -> vector<8x32xf32>
    %63 = arith.addf %60, %62 : vector<8x32xf32>
    %c0_29 = arith.constant 0 : index
    %c0_30 = arith.constant 0 : index
    %64 = vector.load %arg13[%c0_29, %c0_30] : memref<1x32xf32, #tpu.memory_space<vmem>>, vector<1x32xf32>
    %65 = vector.broadcast %64 : vector<1x32xf32> to vector<8x32xf32>
    %66 = arith.addf %63, %65 : vector<8x32xf32>
    %cst_31 = arith.constant 0.000000e+00 : f32
    %67 = vector.broadcast %cst_31 : f32 to vector<8x32xf32>
    %68 = arith.maximumf %66, %67 : vector<8x32xf32>
    %c0_32 = arith.constant 0 : index
    %c0_33 = arith.constant 0 : index
    %69 = vector.load %arg14[%c0_32, %c0_33] : memref<32x1xf32, #tpu.memory_space<vmem>>, vector<32x1xf32>
    %cst_34 = arith.constant dense<0.000000e+00> : vector<8x1xf32>
    %70 = tpu.matmul %68, %69, %cst_34 {dimension_numbers = #tpu.dot_dimension_numbers<[1], [0], [0], [1], [0, 0, 1, 1], [], []>} : vector<8x32xf32>, vector<32x1xf32>, vector<8x1xf32> -> vector<8x1xf32>
    %71 = vector.broadcast %1 : f32 to vector<8x1xf32>
    %72 = arith.addf %70, %71 : vector<8x1xf32>
    %c0_35 = arith.constant 0 : index
    %c0_36 = arith.constant 0 : index
    %73 = vector.load %arg15[%c0_35, %c0_36] : memref<8x1xf32, #tpu.memory_space<vmem>>, vector<8x1xf32>
    tpu.vector_store %arg15[%c0_35, %c0_36], %72 {strides = array<i32>} : memref<8x1xf32, #tpu.memory_space<vmem>>, vector<8x1xf32>,
    return
  }
  func.func @transform_0(%arg0: i32) -> i32 {
    %c0_i32 = arith.constant 0 : i32
    %c0_i32_0 = arith.constant 0 : i32
    return %c0_i32 : i32
  }
  func.func @transform_1(%arg0: i32) -> (i32, i32) {
    %c0_i32 = arith.constant 0 : i32
    %c0_i32_0 = arith.constant 0 : i32
    return %arg0, %c0_i32 : i32, i32
  }
  func.func @transform_2(%arg0: i32) -> (i32, i32) {
    %c0_i32 = arith.constant 0 : i32
    %c0_i32_0 = arith.constant 0 : i32
    return %arg0, %c0_i32 : i32, i32
  }
  func.func @transform_3(%arg0: i32) -> (i32, i32) {
    %c0_i32 = arith.constant 0 : i32
    %c0_i32_0 = arith.constant 0 : i32
    return %arg0, %c0_i32 : i32, i32
  }
  func.func @transform_4(%arg0: i32) -> (i32, i32) {
    %c0_i32 = arith.constant 0 : i32
    %c0_i32_0 = arith.constant 0 : i32
    %c0_i32_1 = arith.constant 0 : i32
    return %c0_i32, %c0_i32_0 : i32, i32
  }
  func.func @transform_5(%arg0: i32) -> (i32, i32) {
    %c0_i32 = arith.constant 0 : i32
    %c0_i32_0 = arith.constant 0 : i32
    %c0_i32_1 = arith.constant 0 : i32
    return %c0_i32, %c0_i32_0 : i32, i32
  }
  func.func @transform_6(%arg0: i32) -> (i32, i32) {
    %c0_i32 = arith.constant 0 : i32
    %c0_i32_0 = arith.constant 0 : i32
    %c0_i32_1 = arith.constant 0 : i32
    return %c0_i32, %c0_i32_0 : i32, i32
  }
  func.func @transform_7(%arg0: i32) -> (i32, i32) {
    %c0_i32 = arith.constant 0 : i32
    %c0_i32_0 = arith.constant 0 : i32
    %c0_i32_1 = arith.constant 0 : i32
    return %c0_i32, %c0_i32_0 : i32, i32
  }
  func.func @transform_8(%arg0: i32) -> (i32, i32) {
    %c0_i32 = arith.constant 0 : i32
    %c0_i32_0 = arith.constant 0 : i32
    %c0_i32_1 = arith.constant 0 : i32
    return %c0_i32, %c0_i32_0 : i32, i32
  }
  func.func @transform_9(%arg0: i32) -> (i32, i32) {
    %c0_i32 = arith.constant 0 : i32
    %c0_i32_0 = arith.constant 0 : i32
    %c0_i32_1 = arith.constant 0 : i32
    return %c0_i32, %c0_i32_0 : i32, i32
  }
  func.func @transform_10(%arg0: i32) -> (i32, i32) {
    %c0_i32 = arith.constant 0 : i32
    %c0_i32_0 = arith.constant 0 : i32
    %c0_i32_1 = arith.constant 0 : i32
    return %c0_i32, %c0_i32_0 : i32, i32
  }
  func.func @transform_11(%arg0: i32) -> (i32, i32) {
    %c0_i32 = arith.constant 0 : i32
    %c0_i32_0 = arith.constant 0 : i32
    %c0_i32_1 = arith.constant 0 : i32
    return %c0_i32, %c0_i32_0 : i32, i32
  }
  func.func @transform_12(%arg0: i32) -> (i32, i32) {
    %c0_i32 = arith.constant 0 : i32
    %c0_i32_0 = arith.constant 0 : i32
    %c0_i32_1 = arith.constant 0 : i32
    return %c0_i32, %c0_i32_0 : i32, i32
  }
  func.func @transform_13(%arg0: i32) -> (i32, i32) {
    %c0_i32 = arith.constant 0 : i32
    %c0_i32_0 = arith.constant 0 : i32
    %c0_i32_1 = arith.constant 0 : i32
    return %c0_i32, %c0_i32_0 : i32, i32
  }
  func.func @transform_14(%arg0: i32) -> (i32, i32) {
    %c0_i32 = arith.constant 0 : i32
    %c0_i32_0 = arith.constant 0 : i32
    return %arg0, %c0_i32 : i32, i32
  }
}

</mosaic_0001>

<bundles_post_ra>
// kernel: tpu_custom_call.1
= control target key start
LH: loop header
LB: loop body
LE: loop exit
PB: predicated region body
PF: predicated region fallthrough
CT: control target
= control target key end

     0   :  { %19 = vsyncpa [#allocation4], 0  ;;  %s1353_s0 = inlined_call_operand.hbm [shape: f32[2], index: 0, kind: input, shape index: {}]   ;;  %s1354_s1 = inlined_call_operand.vmem [shape: f32[8,1], index: 1, kind: input, shape index: {}]   ;;  %s1355_s2 = inlined_call_operand.hbm [shape: f32[8,16], index: 2, kind: input, shape index: {}]   ;;  %s1356_s3 = inlined_call_operand.hbm [shape: f32[8,16], index: 3, kind: input, shape index: {}]   ;;  %s1357_s4 = inlined_call_operand.hbm [shape: f32[1,16], index: 4, kind: input, shape index: {}]   ;;  %s1358_s5 = inlined_call_operand.hbm [shape: f32[1,16], index: 5, kind: input, shape index: {}]   ;;  %s1359_s6 = inlined_call_operand.hbm [shape: f32[1,16], index: 6, kind: input, shape index: {}]   ;;  %s1360_s7 = inlined_call_operand.vmem [shape: f32[1,16], index: 7, kind: input, shape index: {}]   ;;  %s1361_s8 = inlined_call_operand.vmem [shape: f32[16,32], index: 8, kind: input, shape index: {}]   ;;  %s1362_s9 = inlined_call_operand.vmem [shape: f32[16,32], index: 9, kind: input, shape index: {}]   ;;  %s1363_s10 = inlined_call_operand.vmem [shape: f32[16,32], index: 10, kind: input, shape index: {}]   ;;  %s1364_s11 = inlined_call_operand.vmem [shape: f32[16,32], index: 11, kind: input, shape index: {}]   ;;  %s1365_s12 = inlined_call_operand.vmem [shape: f32[1,32], index: 12, kind: input, shape index: {}]   ;;  %s1366_s13 = inlined_call_operand.vmem [shape: f32[32,1], index: 13, kind: input, shape index: {}]   ;;  %s1367_s14 = inlined_call_operand.vmem [shape: f32[8,1], index: 14, kind: output, shape index: {}]  }
   0x1   :  { %20 = vsyncpa [#allocation3], 0 }
   0x2   :  { %21 = vsyncpa [#allocation7], 0 }
   0x3   :  { %22 = vsyncpa [#allocation10], 0  ;;  %s1050_s29 = smov [#allocation6]   ;;  %s1051_s15 = smov [#allocation9]  }
   0x4   :  { %s49_s30 = sshll.u32 %s1050_s29, 4  ;;  %s69_s16 = sshll.u32 %s1051_s15, 4  ;;  %s50_s30 = int_to_ptr.vmem [resolvable:$true] %s49_s30  ;;  %s70_s16 = int_to_ptr.vmem [resolvable:$true] %s69_s16 }
   0x5   :  { %s922_s19 = scalar_lea.hbm %s1356_s3, 128 }
   0x6   :  { %p923_p0 = scmp.ne.s32.totalorder %s1356_s3, %s922_s19  ;;  %p926_p1 = scmp.lt.u32.totalorder %s922_s19, %s1356_s3 }
   0x8   :  { %p928_p2 = pnand %p926_p1, %p923_p0 }
   0xa   :  { %931 = shalt.err (!%p928_p2)
}
   0xb   :  { %s932_s24 = scalar_lea.vmem %s50_s30, 128  ;;  %p937_p4 = scmp.lt.s32.totalorder %s50_s30, %s50_s30 }
   0xc   :  { %p933_p3 = scmp.ne.s32.totalorder %s50_s30, %s932_s24  ;;  %p938_p5 = scmp.lt.s32.totalorder %s932_s24, %s932_s24 }
   0xe   :  { %p939_p6 = por %p938_p5, %p937_p4 }
  0x10   :  { %p940_p7 = pnand %p939_p6, %p933_p3 }
  0x12   :  { %943 = shalt.err (!%p940_p7)
}
  0x13   :  { %52 = dma.hbm_to_vmem [thread:$0]  %s1356_s3, 128, %s50_s30, [#allocation7]  }
  0x14   :  { %s944_s29 = scalar_lea.hbm %s1358_s5, 16 }
  0x15   :  { %p945_p8 = scmp.ne.s32.totalorder %s1358_s5, %s944_s29  ;;  %p948_p9 = scmp.lt.u32.totalorder %s944_s29, %s1358_s5 }
  0x17   :  { %p950_p10 = pnand %p948_p9, %p945_p8 }
  0x19   :  { %953 = shalt.err (!%p950_p10)
}
  0x1a   :  { %s954_s20 = scalar_lea.vmem %s70_s16, 16  ;;  %s958_s21 = scalar_lea.vmem %s70_s16, 32 }
  0x1b   :  { %p955_p11 = scmp.ne.s32.totalorder %s70_s16, %s954_s20  ;;  %p959_p12 = scmp.lt.s32.totalorder %s70_s16, %s70_s16 }
  0x1c   :  { %p960_p13 = scmp.lt.s32.totalorder %s958_s21, %s954_s20 }
  0x1e   :  { %p961_p0 = por %p960_p13, %p959_p12 }
  0x20   :  { %p962_p1 = pnand %p961_p0, %p955_p11 }
  0x22   :  { %965 = shalt.err (!%p962_p1)
}
  0x23   :  { %72 = dma.hbm_to_vmem [thread:$0]  %s1358_s5, 16, %s70_s16, [#allocation10]  }
  0x24   :  { %s966_s24 = scalar_lea.hbm %s1353_s0, 16 }
  0x25   :  { %p967_p2 = scmp.ne.s32.totalorder %s1353_s0, %s966_s24  ;;  %p970_p3 = scmp.lt.u32.totalorder %s966_s24, %s1353_s0 }
  0x27   :  { %p972_p4 = pnand %p970_p3, %p967_p2 }
  0x29   :  { %975 = shalt.err (!%p972_p4)
}
  0x2a   :  { %s1052_s29 = smov [#allocation2]   ;;  %s1053_s5 = smov [#allocation5]  }
  0x2b   :  { %30 = dma.hbm_to_smem %s1353_s0, 16, %s1052_s29, [#allocation4]  }
  0x2c   :  { %s39_s16 = sshll.u32 %s1053_s5, 4  ;;  %s1054_s18 = smov [#allocation8]   ;;  %s40_s16 = int_to_ptr.vmem [resolvable:$true] %s39_s16 }
  0x2d   :  { %s59_s19 = sshll.u32 %s1054_s18, 4  ;;  %s976_s3 = scalar_lea.hbm %s1355_s2, 128  ;;  %s60_s19 = int_to_ptr.vmem [resolvable:$true] %s59_s19 }
  0x2e   :  { %p977_p5 = scmp.ne.s32.totalorder %s1355_s2, %s976_s3  ;;  %p980_p6 = scmp.lt.u32.totalorder %s976_s3, %s1355_s2 }
  0x30   :  { %p982_p7 = pnand %p980_p6, %p977_p5 }
  0x32   :  { %985 = shalt.err (!%p982_p7)
}
  0x33   :  { %s986_s0 = scalar_lea.vmem %s40_s16, 128  ;;  %p991_p9 = scmp.lt.s32.totalorder %s40_s16, %s40_s16 }
  0x34   :  { %p987_p8 = scmp.ne.s32.totalorder %s40_s16, %s986_s0  ;;  %p992_p10 = scmp.lt.s32.totalorder %s986_s0, %s986_s0 }
  0x36   :  { %p993_p11 = por %p992_p10, %p991_p9 }
  0x38   :  { %p994_p12 = pnand %p993_p11, %p987_p8 }
  0x3a   :  { %997 = shalt.err (!%p994_p12)
}
  0x3b   :  { %42 = dma.hbm_to_vmem [thread:$0]  %s1355_s2, 128, %s40_s16, [#allocation3]  }
  0x3c   :  { %s998_s29 = scalar_lea.hbm %s1357_s4, 16 }
  0x3d   :  { %p999_p13 = scmp.ne.s32.totalorder %s1357_s4, %s998_s29  ;;  %p1002_p0 = scmp.lt.u32.totalorder %s998_s29, %s1357_s4 }
  0x3f   :  { %p1004_p1 = pnand %p1002_p0, %p999_p13 }
  0x41   :  { %1007 = shalt.err (!%p1004_p1)
}
  0x42   :  { %s1008_s20 = scalar_lea.vmem %s60_s19, 16  ;;  %s1012_s21 = scalar_lea.vmem %s60_s19, 32 }
  0x43   :  { %p1009_p2 = scmp.ne.s32.totalorder %s60_s19, %s1008_s20  ;;  %p1013_p3 = scmp.lt.s32.totalorder %s60_s19, %s60_s19 }
  0x44   :  { %p1014_p4 = scmp.lt.s32.totalorder %s1012_s21, %s1008_s20 }
  0x46   :  { %p1015_p5 = por %p1014_p4, %p1013_p3 }
  0x48   :  { %p1016_p6 = pnand %p1015_p5, %p1009_p2 }
  0x4a   :  { %1019 = shalt.err (!%p1016_p6)
}
  0x4b   :  { %62 = dma.hbm_to_vmem [thread:$0]  %s1357_s4, 16, %s60_s19, [#allocation7]  }
  0x4c   :  { %s1055_s3 = smov [#allocation11]   ;;  %s1020_s24 = scalar_lea.hbm %s1359_s6, 16 }
  0x4d   :  { %s79_s30 = sshll.u32 %s1055_s3, 4  ;;  %p1021_p7 = scmp.ne.s32.totalorder %s1359_s6, %s1020_s24  ;;  %s80_s30 = int_to_ptr.vmem [resolvable:$true] %s79_s30 }
  0x4e   :  { %p1024_p8 = scmp.lt.u32.totalorder %s1020_s24, %s1359_s6 }
  0x50   :  { %p1026_p9 = pnand %p1024_p8, %p1021_p7 }
  0x52   :  { %1029 = shalt.err (!%p1026_p9)
}
  0x53   :  { %s1030_s28 = scalar_lea.vmem %s80_s30, 16  ;;  %s1034_s4 = scalar_lea.vmem %s80_s30, 32 }
  0x54   :  { %p1031_p10 = scmp.ne.s32.totalorder %s80_s30, %s1030_s28  ;;  %p1035_p11 = scmp.lt.s32.totalorder %s80_s30, %s80_s30 }
  0x55   :  { %p1036_p12 = scmp.lt.s32.totalorder %s1034_s4, %s1030_s28 }
  0x57   :  { %p1037_p13 = por %p1036_p12, %p1035_p11 }
  0x59   :  { %p1038_p0 = pnand %p1037_p13, %p1031_p10 }
  0x5b   :  { %1041 = shalt.err (!%p1038_p0)
}
  0x5c   :  { %82 = dma.hbm_to_vmem [thread:$0]  %s1359_s6, 16, %s80_s30, [#allocation10]  }
  0x5d   :  { %1042 = dma.done.wait [#allocation4], 16  }
  0x5e   :  { %1043 = vsyncadd [#allocation4], 4294967280 }
  0x5f   :  { %1044 = dma.done.wait [#allocation3], 128  }
  0x60   :  { %1045 = vsyncadd [#allocation3], 4294967168 }
  0x61   :  { %1046 = dma.done.wait [#allocation7], 144  }
  0x62   :  { %1047 = vsyncadd [#allocation7], 4294967152 }
  0x63   :  { %1048 = dma.done.wait [#allocation10], 32  }
  0x64   :  { %1049 = vsyncadd [#allocation10], 4294967264 }
  0x65   :  { %115 = sfence }
  0x66   :  { %v118_v0 = vld [vmem:[%s1354_s1] sm:$0xff]  ;;  %v1056_v1 = vmov 0   ;;  %v793_v2 = vld [vmem:[#allocation8] ss:$0 sm:$0xff]  ;;  %v799_v3 = vld [vmem:[#allocation9] ss:$0 sm:$0xff] }
  0x67   :  { %909 = vset.pattern.permute.xlu0 %v1056_v1  ;;  %v1057_v27 = vmov 683565275   ;;  %v1058_v31 = vmov 2475754826   ;;  %v1059_v33 = vmov 2131351028  }
  0x68   :  { %123 = vperm.xlu0 %909, %v118_v0   ;;  %v1060_v35 = vmov 2102212464   ;;  %v1061_v37 = vmov 920167782   ;;  %v1062_v44 = vmov 1326507024  }
  0x69   :  { %s1287_s1 = sld [smem:[#allocation2]] }
  0xe7   :  { %v124_v4 = vpop.permute.xlu0 %123 }
  0xe8   :  { %v1216_v5 = vmul.f32 %v793_v2, %v124_v4  ;;  %v1218_v6 = vmul.f32 %v799_v3, %v124_v4 }
  0xea   :  { %v133_v7 = vand.u32 2147483647, %v1216_v5  ;;  %v136_v8 = vand.u32 2139095040, %v1216_v5  ;;  %v257_v9 = vand.u32 2139095040, %v1218_v6  ;;  %v254_v12 = vand.u32 2147483647, %v1218_v6 }
  0xeb   :  { %vm135_vm14 = vcmp.lt.s32.totalorder %v1216_v5, 0 }
  0xec   :  { %v137_v10 = vshrl.u32 %v136_v8, 23  ;;  %v140_v11 = vand.u32 8388607, %v133_v7  ;;  %v258_v13 = vshrl.u32 %v257_v9, 23  ;;  %v1228_v18 = vand.u32 8388607, %v254_v12 }
  0xed   :  { %vm1271_vm15 = vcmp.le.f32.partialorder %v133_v7, 0.7853982 }
  0xee   :  { %v794_v14 = vadd.s32 4294967169, %v137_v10  ;;  %v800_v15 = vadd.s32 4294967169, %v258_v13  ;;  %v141_v17 = vor.u32 8388608, %v140_v11  ;;  %v262_v25 = vor.u32 8388608, %v1228_v18 }
  0xf0   :  { %v143_v16 = vadd.s32 1, %v794_v14  ;;  %v264_v19 = vadd.s32 1, %v800_v15  ;;  %v1230_v24 = vshll.u32 %v141_v17, 8 }
  0xf2   :  { %vm144_vm0 = vcmp.gt.s32.totalorder %v143_v16, 0  ;;  %vm265_vm1 = vcmp.gt.s32.totalorder %v264_v19, 0 }
  0xf3   :  { %v145_v20 = vsel %vm144_vm0, %v143_v16, 0  ;;  %v266_v23 = vsel %vm265_vm1, %v264_v19, 0  ;;  %v302_v19 = vshll.u32 %v262_v25, 8  ;;  %vm256_vm0 = vcmp.lt.s32.totalorder %v1218_v6, 0 }
  0xf4   :  { %v146_v21 = vshrl.u32 %v145_v20, 5  ;;  %v147_v22 = vand.u32 31, %v145_v20  ;;  %v1233_v29 = vshrl.u32 %v266_v23, 5  ;;  %v268_v30 = vand.u32 31, %v266_v23 }
  0xf5   :  { %vm1283_vm1 = vcmp.le.f32.partialorder %v254_v12, 0.7853982 }
  0xf6   :  { %v148_v26 = vsub.s32 32, %v147_v22  ;;  %v150_v28 = vshll.u32 %v1057_v27, %v147_v22  ;;  %v153_v32 = vshll.u32 %v1058_v31, %v147_v22  ;;  %v156_v34 = vshll.u32 %v1059_v33, %v147_v22 }
  0xf7   :  { %v159_v36 = vshll.u32 %v1060_v35, %v147_v22  ;;  %v162_v38 = vshll.u32 %v1061_v37, %v147_v22  ;;  %vm165_vm2 = vcmp.lt.s32.totalorder %v146_v21, 1  ;;  %vm166_vm3 = vcmp.lt.s32.totalorder %v146_v21, 2 }
  0xf8   :  { %v151_v39 = vshrl.u32 %v1058_v31, %v148_v26  ;;  %v154_v40 = vshrl.u32 %v1059_v33, %v148_v26  ;;  %v157_v41 = vshrl.u32 %v1060_v35, %v148_v26  ;;  %v149_v42 = vshrl.u32 %v1057_v27, %v148_v26 }
  0xf9   :  { %v160_v43 = vshrl.u32 %v1061_v37, %v148_v26  ;;  %v163_v45 = vshrl.u32 %v1062_v44, %v148_v26  ;;  %v269_v49 = vsub.s32 32, %v268_v30  ;;  %vm167_vm4 = vcmp.lt.s32.totalorder %v146_v21, 3 }
  0xfa   :  { %v152_v46 = vor.u32 %v151_v39, %v150_v28  ;;  %v155_v47 = vor.u32 %v154_v40, %v153_v32  ;;  %v158_v48 = vor.u32 %v157_v41, %v156_v34  ;;  %vm168_vm5 = vcmp.lt.s32.totalorder %v146_v21, 4 }
  0xfb   :  { %v161_v50 = vor.u32 %v160_v43, %v159_v36  ;;  %v164_v51 = vor.u32 %v163_v45, %v162_v38  ;;  %v271_v59 = vshll.u32 %v1057_v27, %v268_v30  ;;  %v272_v62 = vshrl.u32 %v1058_v31, %v269_v49 }
  0xfc   :  { %v169_v52 = vsel %vm165_vm2, %v149_v42, %v152_v46  ;;  %v170_v53 = vsel %vm168_vm5, %v158_v48, 2102212464  ;;  %v173_v54 = vsel %vm165_vm2, %v152_v46, %v155_v47  ;;  %v177_v55 = vsel %vm165_vm2, %v155_v47, %v158_v48 }
  0xfd   :  { %v171_v56 = vsel %vm167_vm4, %v155_v47, %v170_v53  ;;  %v174_v57 = vsel %vm168_vm5, %v161_v50, 920167782  ;;  %v178_v58 = vsel %vm168_vm5, %v164_v51, 1326507024  ;;  %v274_v63 = vshll.u32 %v1058_v31, %v268_v30 }
  0xfe   :  { %v175_v60 = vsel %vm167_vm4, %v158_v48, %v174_v57  ;;  %v179_v61 = vsel %vm167_vm4, %v161_v50, %v178_v58  ;;  %v172_v0 = vsel %vm166_vm3, %v169_v52, %v171_v56  ;;  %v275_v3 = vshrl.u32 %v1059_v33, %v269_v49 }
  0xff   :  { %v176_v1 = vsel %vm166_vm3, %v173_v54, %v175_v60  ;;  %v180_v2 = vsel %vm166_vm3, %v177_v55, %v179_v61  ;;  %v273_v11 = vor.u32 %v272_v62, %v271_v59  ;;  %v277_v14 = vshll.u32 %v1059_v33, %v268_v30 }
 0x100   :  { %v1242_v4 = vmul.u32.u64.low %v1230_v24, %v180_v2  ;;  %v1243_v8 = vmul.u32.u64.high %v1230_v24, %v180_v2, %v1242_v4  ;;  %v1246_v9 = vmul.u32.u64.low %v1230_v24, %v176_v1  ;;  %v1247_v10 = vmul.u32.u64.high %v1230_v24, %v176_v1, %v1246_v9 }
 0x101   :  { %v276_v13 = vor.u32 %v275_v3, %v274_v63  ;;  %v278_v15 = vshrl.u32 %v1060_v35, %v269_v49  ;;  %v280_v16 = vshll.u32 %v1060_v35, %v268_v30  ;;  %v281_v17 = vshrl.u32 %v1061_v37, %v269_v49 }
 0x102   :  { %v284_v18 = vshrl.u32 %v1062_v44, %v269_v49  ;;  %v188_v20 = vmul.u32 %v1230_v24, %v172_v0  ;;  %v270_v21 = vshrl.u32 %v1057_v27, %v269_v49  ;;  %v283_v23 = vshll.u32 %v1061_v37, %v268_v30 }
 0x103   :  { %v279_v22 = vor.u32 %v278_v15, %v277_v14  ;;  %vm190_vm6 = vc.u32 %v1243_v8, %v1246_v9  ;;  %v191_v26 = vadd.s32 1, %v1247_v10  ;;  %v282_v28 = vor.u32 %v281_v17, %v280_v16 }
 0x104   :  { %vm286_vm7 = vcmp.lt.s32.totalorder %v1233_v29, 1  ;;  %v285_v31 = vor.u32 %v284_v18, %v283_v23  ;;  %vm288_vm8 = vcmp.lt.s32.totalorder %v1233_v29, 3  ;;  %vm289_vm9 = vcmp.lt.s32.totalorder %v1233_v29, 4 }
 0x105   :  { %v294_v32 = vsel %vm286_vm7, %v273_v11, %v276_v13  ;;  %v192_v25 = vsel %vm190_vm6, %v191_v26, %v1247_v10  ;;  %v291_v33 = vsel %vm289_vm9, %v279_v22, 2102212464  ;;  %v295_v24 = vsel %vm289_vm9, %v282_v28, 920167782 }
 0x106   :  { %v298_v27 = vsel %vm286_vm7, %v276_v13, %v279_v22  ;;  %v193_v34 = vadd.s32 %v192_v25, %v188_v20  ;;  %vm287_vm10 = vcmp.lt.s32.totalorder %v1233_v29, 2  ;;  %v296_v30 = vsel %vm288_vm8, %v279_v22, %v295_v24 }
 0x107   :  { %v299_v35 = vsel %vm289_vm9, %v285_v31, 1326507024  ;;  %v290_v36 = vsel %vm286_vm7, %v270_v21, %v273_v11  ;;  %v292_v37 = vsel %vm288_vm8, %v276_v13, %v291_v33  ;;  %v297_v38 = vsel %vm287_vm10, %v294_v32, %v296_v30 }
 0x108   :  { %v300_v39 = vsel %vm288_vm8, %v282_v28, %v299_v35  ;;  %v194_v40 = vadd.s32 536870912, %v193_v34  ;;  %v1257_v42 = vmul.u32.u64.low %v302_v19, %v297_v38  ;;  %v1258_v43 = vmul.u32.u64.high %v302_v19, %v297_v38, %v1257_v42 }
 0x109   :  { %v301_v41 = vsel %vm287_vm10, %v298_v27, %v300_v39  ;;  %v293_v47 = vsel %vm287_vm10, %v290_v36, %v292_v37  ;;  %v189_v63 = vadd.s32 %v1246_v9, %v1243_v8  ;;  %vm225_vm5 = vweird.f32 %v1216_v5  ;;  %v618_v39 = vld [vmem:[%s1364_s11] sm:$0xff] }
 0x10a   :  { %v1260_v44 = vmul.u32.u64.low %v302_v19, %v301_v41  ;;  %v1261_v45 = vmul.u32.u64.high %v302_v19, %v301_v41, %v1260_v44  ;;  %v195_v46 = vshrl.u32 %v194_v40, 30  ;;  %v312_v49 = vadd.s32 1, %v1258_v43 }
 0x10b   :  { %v309_v29 = vmul.u32 %v302_v19, %v293_v47  ;;  %vm346_vm9 = vweird.f32 %v1218_v6  ;;  %vm374_vm10 = vcmask 130048  }
 0x10c   :  { %v196_v48 = vshll.u32 %v195_v46, 30  ;;  %vm311_vm11 = vc.u32 %v1261_v45, %v1257_v42  ;;  %v310_v20 = vadd.s32 %v1257_v42, %v1261_v45  ;;  %v219_v24 = vsub.s32 4, %v195_v46 }
 0x10d   :  { %v313_v51 = vsel %vm311_vm11, %v312_v49, %v1258_v43  ;;  %vm1064_vm11 = vmmov 0  }
 0x10e   :  { %v197_v50 = vsub.s32 %v193_v34, %v196_v48  ;;  %v314_v52 = vadd.s32 %v313_v51, %v309_v29  ;;  %v220_v36 = vsel %vm135_vm14, %v219_v24, %v195_v46  ;;  %v236_v51 = vstv %s1287_s1 }
 0x10f   :  { %v222_v38 = vsel %vm1271_vm15, 0, %v220_v36 }
 0x110   :  { %v199_v53 = vsub.s32 0, %v197_v50  ;;  %v315_v54 = vadd.s32 536870912, %v314_v52  ;;  %v226_v42 = vand.u32 3, %v222_v38 }
 0x112   :  { %v795_v55 = vmin.u32 %v199_v53, %v197_v50  ;;  %v316_v56 = vshrl.u32 %v315_v54, 30  ;;  %vm231_vm2 = vcmp.eq.s32.totalorder %v226_v42, 2  ;;  %vm228_vm3 = vcmp.eq.s32.totalorder %v226_v42, 0 }
 0x113   :  { %vm227_vm4 = vcmp.lt.s32.totalorder %v226_v42, 2 }
 0x114   :  { %v201_v57 = vclz %v795_v55  ;;  %v317_v58 = vshll.u32 %v316_v56, 30  ;;  %v340_v41 = vsub.s32 4, %v316_v56 }
 0x116   :  { %v796_v59 = vadd.s32 4294967294, %v201_v57  ;;  %v318_v60 = vsub.s32 %v314_v52, %v317_v58  ;;  %v341_v46 = vsel %vm256_vm0, %v340_v41, %v316_v56  ;;  %v798_v57 = vld [vmem:[#allocation11] ss:$0 sm:$0xff] }
 0x117   :  { %v343_v49 = vsel %vm1283_vm1, 0, %v341_v46 }
 0x118   :  { %vm797_vm12 = vcmp.lt.s32.totalorder %v796_v59, 0  ;;  %v320_v62 = vsub.s32 0, %v318_v60  ;;  %v347_v53 = vand.u32 3, %v343_v49 }
 0x119   :  { %v204_v61 = vsel %vm797_vm12, 0, %v796_v59  ;;  %vm708_vm12 = vcmask 261120  }
 0x11a   :  { %v205_v0 = vsub.s32 32, %v204_v61  ;;  %v209_v1 = vsub.s32 4294967266, %v204_v61  ;;  %v801_v2 = vmin.u32 %v320_v62, %v318_v60  ;;  %v206_v3 = vshll.u32 %v197_v50, %v204_v61 }
 0x11b   :  { %vm352_vm6 = vcmp.eq.s32.totalorder %v347_v53, 2  ;;  %vm349_vm7 = vcmp.eq.s32.totalorder %v347_v53, 0  ;;  %vm348_vm8 = vcmp.lt.s32.totalorder %v347_v53, 2 }
 0x11c   :  { %v207_v4 = vshrl.u32 %v189_v63, %v205_v0  ;;  %v210_v10 = vadd.s32 127, %v209_v1  ;;  %v322_v11 = vclz %v801_v2  ;;  %v366_v63 = vld [vmem:[#allocation6] sm:$0xff]  ;;  %v365_v0 = vld [vmem:[#allocation5] sm:$0xff] }
 0x11d   :  { %v804_v1 = vld [vmem:[%s1360_s7] ss:$0 sm:$0xff] }
 0x11e   :  { %v208_v13 = vor.u32 %v207_v4, %v206_v3  ;;  %v211_v14 = vshll.u32 %v210_v10, 23  ;;  %v802_v15 = vadd.s32 4294967294, %v322_v11 }
 0x120   :  { %v212_v16 = vor.u32 4788187, %v211_v14  ;;  %vm803_vm13 = vcmp.lt.s32.totalorder %v802_v15, 0  ;;  %v215_v18 = vcvt.s32.f32 %v208_v13 }
 0x121   :  { %v325_v19 = vsel %vm803_vm13, 0, %v802_v15  ;;  %vm782_vm13 = vcmask 7168  }
 0x122   :  { %v213_v17 = vand.u32 2147483647, %v212_v16  ;;  %v326_v21 = vsub.s32 32, %v325_v19  ;;  %v330_v22 = vsub.s32 4294967266, %v325_v19  ;;  %v327_v9 = vshll.u32 %v318_v60, %v325_v19 }
 0x124   :  { %v216_v8 = vmul.f32 %v215_v18, %v213_v17  ;;  %v328_v23 = vshrl.u32 %v310_v20, %v326_v21  ;;  %v331_v26 = vadd.s32 127, %v330_v22  ;;  %v394_v22 = vld [vmem:[%s1362_s9] sm:$0xff] }
 0x126   :  { %v217_v28 = vxor.u32 2147483648, %v216_v8  ;;  %v329_v31 = vor.u32 %v328_v23, %v327_v9  ;;  %v332_v32 = vshll.u32 %v331_v26, 23  ;;  %v542_v9 = vld [vmem:[%s1363_s10] sm:$0xff]  ;;  %v543_v26 = vld [vmem:[%s1363_s10 + $0x8] sm:$0xff] }
 0x128   :  { %v218_v33 = vsel %vm135_vm14, %v217_v28, %v216_v8  ;;  %v333_v34 = vor.u32 4788187, %v332_v32  ;;  %v336_v35 = vcvt.s32.f32 %v329_v31  ;;  %v395_v8 = vld [vmem:[%s1362_s9 + $0x8] sm:$0xff]  ;;  %v1063_v28 = vmov 0.0|0.0  }
 0x129   :  { %v221_v27 = vsel %vm1271_vm15, %v1216_v5, %v218_v33  ;;  %v868_v23 = vpack.c.bf16 %v395_v8, %v394_v22  ;;  %867 = vmatprep.subr.bf16.mxu1 %v1063_v28  ;;  %873 = vmatprep.subr.bf16.mxu0 %v1063_v28  ;;  %v874_v31 = vpack.c.bf16 %v543_v26, %v542_v9  ;;  %v1065_v32 = vmov 0.0  }
 0x12a   :  { %910 = vcosq.f32 %v221_v27  ;;  %v334_v30 = vand.u32 2147483647, %v333_v34  ;;  %832 = vmatprep.mubr.msk.f32.mxu1 %vm1064_vm11, %v1065_v32  ;;  %846 = vmatprep.mubr.msk.f32.mxu0 %vm1064_vm11, %v1065_v32  ;;  %v392_v34 = vld [vmem:[%s1361_s8] sm:$0xff] }
 0x12b   :  { %912 = vsinq.f32 %v221_v27  ;;  %869 = vmatpush3.bf16.msra.mxu1 %v868_v23  ;;  %875 = vmatpush3.bf16.msra.mxu0 %v874_v31 }
 0x12c   :  { %v337_v37 = vmul.f32 %v336_v35, %v334_v30  ;;  %870 = vmatprep.subr.bf16.mxu1 %v1063_v28  ;;  %879 = vmatprep.subr.bf16.mxu0 %v1063_v28  ;;  %v393_v30 = vld [vmem:[%s1361_s8 + $0x8] sm:$0xff] }
 0x12e   :  { %v338_v7 = vxor.u32 2147483648, %v337_v37 }
 0x130   :  { %v339_v40 = vsel %vm256_vm0, %v338_v7, %v337_v37  ;;  %v871_v37 = vpack.c.bf16 %v393_v30, %v392_v34 }
 0x131   :  { %v342_v43 = vsel %vm1283_vm1, %v1218_v6, %v339_v40  ;;  %v619_v40 = vld [vmem:[%s1364_s11 + $0x8] sm:$0xff] }
 0x132   :  { %914 = vcosq.f32 %v342_v43  ;;  %v877_v41 = vpack.c.bf16 %v619_v40, %v618_v39 }
 0x133   :  { %916 = vsinq.f32 %v342_v43 }
 0x134   :  { %v911_v44 = vpop.eup %910 }
 0x135   :  { %v913_v45 = vpop.eup %912  ;;  %v232_v47 = vxor.u32 2147483648, %v911_v44 }
 0x136   :  { %v229_v12 = vxor.u32 2147483648, %v913_v45 }
 0x137   :  { %v233_v48 = vsel %vm231_vm2, %v232_v47, %v913_v45  ;;  %v704_v45 = vld [vmem:[%s1366_s13 + $0x8] sm:$0xff]  ;;  %v705_v47 = vld [vmem:[%s1366_s13 + $0x10] sm:$0xff] }
 0x138   :  { %v230_v29 = vsel %vm228_vm3, %v911_v44, %v229_v12  ;;  %v703_v44 = vld [vmem:[%s1366_s13] sm:$0xff]  ;;  %v706_v12 = vld [vmem:[%s1366_s13 + $0x18] sm:$0xff]  ;;  %s792_s13 = sld [smem:[#allocation2 + $0x1]] }
 0x139   :  { %v234_v50 = vsel %vm227_vm4, %v230_v29, %v233_v48  ;;  %v880_v46 = vpack.c.bf16 %v704_v45, %v703_v44  ;;  %v883_v48 = vpack.c.bf16 %v706_v12, %v705_v47 }
 0x13a   :  { %v235_v52 = vsel %vm225_vm5, nan, %v234_v50 }
 0x13b   :  { %v237_v54 = vmul.f32 %v236_v51, %v235_v52 }
 0x13c   :  { %v915_v55 = vpop.eup %914 }
 0x13d   :  { %v917_v56 = vpop.eup %916  ;;  %v353_v58 = vxor.u32 2147483648, %v915_v55  ;;  %v244_v60 = vadd.f32 %v798_v57, %v237_v54 }
 0x13e   :  { %v350_v59 = vxor.u32 2147483648, %v917_v56 }
 0x13f   :  { %v354_v61 = vsel %vm352_vm6, %v353_v58, %v917_v56  ;;  %v369_v4 = vmul.f32 %v366_v63, %v244_v60  ;;  %v367_v10 = vmul.f32 %v365_v0, %v244_v60  ;;  %v809_v56 = vld [vmem:[%s1365_s12] ss:$0 sm:$0xff] }
 0x140   :  { %v351_v62 = vsel %vm349_vm7, %v915_v55, %v350_v59 }
 0x141   :  { %v355_v5 = vsel %vm348_vm8, %v351_v62, %v354_v61  ;;  %v380_v14 = vmul.f32 %v369_v4, %v369_v4  ;;  %v371_v16 = vmul.f32 %v367_v10, %v367_v10  ;;  %v707_v62 = vstv %s792_s13 }
 0x142   :  { %v356_v2 = vsel %vm346_vm9, nan, %v355_v5 }
 0x143   :  { %v357_v3 = vmul.f32 %v356_v2, %v236_v51 }
 0x145   :  { %v364_v11 = vadd.f32 %v804_v1, %v357_v3 }
 0x147   :  { %v370_v13 = vmul.f32 %v366_v63, %v364_v11  ;;  %v368_v15 = vmul.f32 %v365_v0, %v364_v11 }
 0x149   :  { %v381_v17 = vmul.f32 %v370_v13, %v370_v13  ;;  %v372_v18 = vmul.f32 %v368_v15, %v368_v15 }
 0x14b   :  { %v382_v19 = vadd.f32 %v381_v17, %v380_v14  ;;  %v373_v20 = vadd.f32 %v372_v18, %v371_v16 }
 0x14d   :  { %v383_v6 = vsel %vm374_vm10, %v382_v19, 0.0  ;;  %v375_v21 = vsel %vm374_vm10, %v373_v20, 0.0 }
 0x14e   :  { %384 = vadd.xlane.f32.xlu1 %v383_v6  ;;  %376 = vadd.xlane.f32.xlu0 %v375_v21 }
 0x1db   :  { %v385_v25 = vpop.xlane.xlu1 %384  ;;  %v377_v33 = vpop.xlane.xlu0 %376 }
 0x1dc   :  { %v386_v24 = vmax.f32 %v385_v25, 1e-24  ;;  %v378_v27 = vmax.f32 %v377_v33, 1e-24 }
 0x1de   :  { %918 = vrsqrt.f32 %v386_v24 }
 0x1df   :  { %920 = vrsqrt.f32 %v378_v27 }
 0x1e8   :  { %v919_v35 = vpop.eup %918 }
 0x1e9   :  { %v921_v36 = vpop.eup %920  ;;  %v390_v38 = vmul.f32 %v919_v35, %v369_v4  ;;  %v391_v43 = vmul.f32 %v919_v35, %v370_v13 }
 0x1ea   :  { %v389_v7 = vmul.f32 %v921_v36, %v368_v15  ;;  %v388_v42 = vmul.f32 %v921_v36, %v367_v10 }
 0x1eb   :  { %847 = vmatmul.mubr.msk.f32.vlgmr.msra.gmra.mrb[0].mxu0 %vm374_vm10, %v390_v38 }
 0x1ec   :  { %833 = vmatmul.mubr.msk.f32.vlgmr.msra.gmra.mrb[0].mxu1 %vm374_vm10, %v389_v7  ;;  %864 = vmatprep.mubr.msk.f32.mxu0 %vm1064_vm11, %v1065_v32 }
 0x1ed   :  { %872 = vmatpush3.bf16.msra.mxu1 %v871_v37  ;;  %839 = vmatprep.mubr.msk.f32.mxu1 %vm1064_vm11, %v1065_v32 }
 0x1ee   :  { %876 = vmatprep.subr.bf16.mxu1 %v1063_v28  ;;  %881 = vmatpush3.bf16.msra.mxu0 %v880_v46 }
 0x1ef   :  { %882 = vmatprep.subr.bf16.mxu0 %v1063_v28 }
 0x1f0   :  { %840 = vmatmul.mubr.msk.f32.vlgmr.msra.gmra.mrb[2].mxu1 %vm374_vm10, %v388_v42 }
 0x1f1   :  { %878 = vmatpush3.bf16.msra.mxu1 %v877_v41  ;;  %853 = vmatprep.mubr.msk.f32.mxu1 %vm1064_vm11, %v1065_v32 }
 0x1f2   :  { %884 = vmatpush3.bf16.msra.mxu0 %v883_v48 }
 0x1f4   :  { %854 = vmatmul.mubr.msk.f32.vlgmr.msra.gmra.mrb[4].mxu1 %vm374_vm10, %v391_v43 }
 0x2be   :  { %v613_v49 = vpop.f32.mrb[0].mxu0 }
 0x2bf   :  { %v465_v29 = vpop.f32.mrb[0].mxu1  ;;  %v848_v50 = vpop.f32.mrb[1].mxu0 }
 0x2c0   :  { %v834_v51 = vpop.f32.mrb[1].mxu1 }
 0x2c3   :  { %v538_v52 = vpop.f32.mrb[2].mxu1 }
 0x2c4   :  { %v539_v53 = vadd.f32 %v538_v52, %v465_v29  ;;  %v841_v54 = vpop.f32.mrb[3].mxu1 }
 0x2c6   :  { %v617_v55 = vadd.f32 %v613_v49, %v539_v53 }
 0x2c7   :  { %v689_v57 = vpop.f32.mrb[4].mxu1 }
 0x2c8   :  { %v693_v58 = vadd.f32 %v689_v57, %v617_v55  ;;  %v855_v59 = vpop.f32.mrb[5].mxu1 }
 0x2ca   :  { %v701_v60 = vadd.f32 %v809_v56, %v693_v58 }
 0x2cc   :  { %v702_v61 = vmax.f32 %v701_v60, 0.0 }
 0x2ce   :  { %865 = vmatmul.mubr.msk.f32.vlgmr.msra.gmra.mrb[2].mxu0 %vm708_vm12, %v702_v61 }
 0x3a1   :  { %v778_v63 = vpop.f32.mrb[2].mxu0 }
 0x3a2   :  { %v779_v0 = vadd.f32 %v778_v63, %v707_v62  ;;  %v866_v5 = vpop.f32.mrb[3].mxu0 }
 0x3a4   :  { %783 = vst.msk [vmem:[%s1367_s14] sm:$0xff] %vm782_vm13, %v779_v0 }
 0x3a5   :  { %788 = vsyncpa [#allocation3], 1 }
 0x3a6   :  { %789 = vsyncpa [#allocation7], 1 }
 0x3a7   :  { %790 = vsyncpa [#allocation10], 1 }
 0x3a8   :  { %791 = vsyncpa [#allocation4], 1 }

</bundles_post_ra>
